<compile_context>
chip_gen: v5e
topology: v5e:2x2
jax: 0.10.0
libtpu: 0.0.40
codegen_flags: <defaults>
</compile_context>

<pallas_src>
import functools
from typing import NamedTuple, Optional

import jax
import jax.numpy as jnp
from jax import lax
from jax.experimental import pallas as pl
from jax.experimental.pallas import tpu as pltpu


def _round_up(a: int, m: int) -> int:
    return (a + m - 1) // m * m


def _device_kind() -> str:
    try:
        return jax.devices()[0].device_kind.lower()
    except Exception:
        return ""


def _is_v6_or_newer(kind: str) -> bool:
    return any(tag in kind for tag in ("v6", "v7", "7x"))


def _vmem_capacity_bytes() -> int:
    try:
        return int(pltpu.get_tpu_info().vmem_capacity_bytes)
    except Exception:
        return 64 * 1024 * 1024  # conservative default (v7x per-TensorCore VMEM)


def _base_n_pad(n: int) -> int:
    # Lane-dense output only when it is (nearly) free. Small N stays unpadded: masked
    # stores are cheaper than doubling sin work + output bytes for a mem-bound layer.
    if n % 128 == 0 or n <= 128:
        return n
    return _round_up(n, 128)


def _sine_kernel(x_ref, w_ref, b_ref, o_ref, *, matmul_dtype, sin_dtype):
    # x_ref: (tb, K) input dtype | w_ref: (K, tn) bf16 | b_ref: (1, tn) f32 | o_ref: (tb, tn)
    x = x_ref[...].astype(matmul_dtype)          # in-kernel cast, hidden under the input DMA
    acc = jnp.dot(x, w_ref[...], preferred_element_type=jnp.float32)  # native [K, N] MXU feed
    acc = acc + b_ref[...]                       # f32 bias add (broadcasts over rows)
    o_ref[...] = jnp.sin(acc.astype(sin_dtype)).astype(o_ref.dtype)


class SineLayerParams(NamedTuple):
    w_t: jax.Array        # [K, N_pad] pre-transposed, pre-cast weight (MXU feed layout)
    b: jax.Array          # [1, N_pad] f32 bias
    out_features: int     # unpadded N


def prepare_sine_layer_params(weight, bias, matmul_dtype=jnp.bfloat16) -> SineLayerParams:
    """One-time prep (at layer construction, NOT per call): cast + transpose + pad the params."""
    N, K = weight.shape
    assert bias.shape == (N,)
    n_pad = _base_n_pad(N)
    w_t = jnp.asarray(weight).T.astype(matmul_dtype)      # [K, N]
    b = jnp.asarray(bias, jnp.float32).reshape(1, N)
    if n_pad != N:
        w_t = jnp.pad(w_t, ((0, 0), (0, n_pad - N)))
        b = jnp.pad(b, ((0, 0), (0, n_pad - N)))
    return SineLayerParams(w_t=w_t, b=b, out_features=N)


def _plan_tiles(B, K, n_pad, x_itemsize, w_itemsize, out_itemsize):
    kind = _device_kind()
    vmem_cap = _vmem_capacity_bytes()
    lane_tile = 256 if _is_v6_or_newer(kind) else 128     # MXU width: 2x256 (v6e/v7x) vs 4x128 (v5e)

    # --- N tiling: keep the whole weight VMEM-resident if it fits the budget. ---
    weight_budget = int(0.35 * vmem_cap)
    full_w_bytes = 2 * K * n_pad * w_itemsize + 2 * n_pad * 4   # double-buffered W + bias
    if n_pad % 128 != 0 or full_w_bytes <= weight_budget:
        tn = n_pad
    else:
        tn = (weight_budget // (2 * K * w_itemsize)) // lane_tile * lane_tile
        tn = max(lane_tile, min(tn, n_pad))
    nn = -(-n_pad // tn)
    n_total = nn * tn

    # --- Batch tiling: fill remaining VMEM, keep enough grid steps to pipeline/megacore. ---
    fixed = 2 * K * tn * w_itemsize + 2 * tn * 4                 # resident weight + bias
    per_row = 2 * K * x_itemsize + 2 * tn * out_itemsize         # double-buffered x + out rows
    budget = int(0.55 * vmem_cap)
    if budget - fixed >= 8 * per_row:
        tb_budget = max(8, (budget - fixed) // per_row // 8 * 8)
    else:
        tb_budget = 8
    b8 = _round_up(max(B, 1), 8)
    tb = min(tb_budget, 1024, b8)
    # >= a few batch steps when B allows: exposes DMA/compute overlap and feeds both v7x
    # TensorCores via the "parallel" batch axis; each extra step costs only ~0.35 us.
    min_steps = max(1, min(4, b8 // 8))
    tb = max(8, min(tb, _round_up(-(-b8 // min_steps), 8)))
    b_pad = _round_up(max(B, 1), tb)
    nb = b_pad // tb

    # --- VMEM limit: footprint + headroom, capped at ~0.8x capacity, never below estimate. ---
    est = fixed + tb * per_row + (4 << 10)
    vmem_limit = int(min(max(1.5 * est, 16 * 2**20), 0.8 * vmem_cap))
    vmem_limit = max(vmem_limit, int(1.2 * est) + (2 << 20))
    return tb, b_pad, nb, tn, n_total, nn, vmem_limit


def sine_layer_apply(x, params: SineLayerParams, *,
                     out_dtype: Optional[jnp.dtype] = None,
                     sin_dtype: Optional[jnp.dtype] = None):
    """x: [B, K] -> sin(x @ W^T + b): [B, N] in out_dtype (default bf16)."""
    B, K = x.shape
    Kp, n_pad = params.w_t.shape
    N = params.out_features
    assert K == Kp, f"in_features mismatch: x has {K}, weight has {Kp}"
    matmul_dtype = params.w_t.dtype
    if out_dtype is None:
        out_dtype = matmul_dtype          # bf16 out: halves the dominant HBM write term
    if sin_dtype is None:
        # packed-bf16 VALU sin on v6e/v7x; f32 on v5e/older or unknown (no bf16 VALU there).
        sin_dtype = jnp.bfloat16 if _is_v6_or_newer(_device_kind()) else jnp.float32

    tb, b_pad, nb, tn, n_total, nn, vmem_limit = _plan_tiles(
        B, K, n_pad,
        jnp.dtype(x.dtype).itemsize,
        jnp.dtype(matmul_dtype).itemsize,
        jnp.dtype(out_dtype).itemsize)

    x_p = x if b_pad == B else jnp.pad(x, ((0, b_pad - B), (0, 0)))
    w_p, b_p = params.w_t, params.b
    if n_total != n_pad:   # rare huge-weight fallback where the N tile does not divide N_pad
        w_p = jnp.pad(w_p, ((0, 0), (0, n_total - n_pad)))
        b_p = jnp.pad(b_p, ((0, 0), (0, n_total - n_pad)))

    kernel = functools.partial(_sine_kernel, matmul_dtype=matmul_dtype, sin_dtype=sin_dtype)

    out = pl.pallas_call(
        kernel,
        out_shape=jax.ShapeDtypeStruct((b_pad, n_total), out_dtype),
        grid_spec=pltpu.PrefetchScalarGridSpec(
            num_scalar_prefetch=0,
            grid=(nn, nb),                                   # N tiles outer, batch tiles inner
            in_specs=[
                pl.BlockSpec((tb, K), lambda j, i: (i, 0)),  # x rows (tiled over inner axis)
                pl.BlockSpec((K, tn), lambda j, i: (0, j)),  # W^T tile: resident across inner loop
                pl.BlockSpec((1, tn), lambda j, i: (0, j)),  # bias tile
            ],
            out_specs=pl.BlockSpec((tb, tn), lambda j, i: (i, j)),
        ),
        compiler_params=pltpu.CompilerParams(
            dimension_semantics=("parallel", "parallel"),    # megacore-shardable on v7x
            vmem_limit_bytes=vmem_limit),
    )(x_p, w_p, b_p)

    return out[:B, :N]


def sine_layer(x, weight, bias, *, out_dtype=None, sin_dtype=None, matmul_dtype=jnp.bfloat16):
    """One-shot convenience wrapper (prefer prepare_sine_layer_params once + apply many)."""
    return sine_layer_apply(x, prepare_sine_layer_params(weight, bias, matmul_dtype),
                            out_dtype=out_dtype, sin_dtype=sin_dtype)


if __name__ == "__main__":
    key = jax.random.PRNGKey(0)
    k_x, k_w, k_b = jax.random.split(key, 3)

    in_features, out_features, batch = 32, 64, 16
    half_range_weight, half_range_bias = 0.5, 0.1

    # Deterministic parameter init mirroring torch.empty(...).uniform_(-hr, hr)
    weight = jax.random.uniform(k_w, (out_features, in_features), jnp.float32,
                                minval=-half_range_weight, maxval=half_range_weight)
    bias = jax.random.uniform(k_b, (out_features,), jnp.float32,
                              minval=-half_range_bias, maxval=half_range_bias)
    x = jax.random.uniform(k_x, (batch, in_features), jnp.float32, minval=-1.0, maxval=1.0)

    params = prepare_sine_layer_params(weight, bias)   # once, outside the hot path

    # Exact f32 reference (PyTorch forward semantics).
    ref_f32 = jnp.sin(x @ weight.T + bias)

    # 1) Default perf configuration: bf16 output, per-chip sin precision.
    out = jax.block_until_ready(sine_layer_apply(x, params))
    assert out.shape == (batch, out_features)
    assert jnp.allclose(out.astype(jnp.float32), ref_f32, atol=5e-2), "bf16-out mismatch"

    # 2) f32 output + f32 sin for a tight numerical check (error only from bf16 MXU inputs).
    out32 = jax.block_until_ready(
        sine_layer_apply(x, params, out_dtype=jnp.float32, sin_dtype=jnp.float32))
    ref_bf16 = jnp.sin(
        lax.dot_general(x.astype(jnp.bfloat16), weight.astype(jnp.bfloat16),
                        dimension_numbers=(((1,), (1,)), ((), ())),
                        preferred_element_type=jnp.float32) + bias)
    assert jnp.allclose(out32, ref_bf16, atol=1e-4, rtol=1e-4)
    assert jnp.allclose(out32, ref_f32, atol=1e-1)

    print("KERNEL_OK")
</pallas_src>

<mosaic_0001>
module attributes {stable_mosaic.version = 11 : i64} {
  func.func @_sine_kernel(%arg0: i32, %arg1: i32, %arg2: memref<8x32xf32, #tpu.memory_space<vmem>>, %arg3: memref<32x64xbf16, #tpu.memory_space<vmem>>, %arg4: memref<1x64xf32, #tpu.memory_space<vmem>>, %arg5: memref<8x64xbf16, #tpu.memory_space<vmem>>) attributes {dimension_semantics = [#tpu.dimension_semantics<parallel>, #tpu.dimension_semantics<parallel>], iteration_bounds = array<i64: 1, 2>, scalar_prefetch = 0 : i64, scratch_operands = 0 : i64, tpu.core_type = #tpu.core_type<tc>, window_params = [{transform_indices = @transform_0, window_bounds = array<i64: 8, 32>}, {transform_indices = @transform_1, window_bounds = array<i64: 32, 64>}, {transform_indices = @transform_2, window_bounds = array<i64: 1, 64>}, {transform_indices = @transform_3, window_bounds = array<i64: 8, 64>}]} {
    %c0 = arith.constant 0 : index
    %c0_0 = arith.constant 0 : index
    %0 = vector.load %arg2[%c0, %c0_0] : memref<8x32xf32, #tpu.memory_space<vmem>>, vector<8x32xf32>
    %1 = arith.truncf %0 : vector<8x32xf32> to vector<8x32xbf16>
    %c0_1 = arith.constant 0 : index
    %c0_2 = arith.constant 0 : index
    %2 = vector.load %arg3[%c0_1, %c0_2] : memref<32x64xbf16, #tpu.memory_space<vmem>>, vector<32x64xbf16>
    %cst = arith.constant dense<0.000000e+00> : vector<8x64xf32>
    %3 = tpu.matmul %1, %2, %cst {dimension_numbers = #tpu.dot_dimension_numbers<[1], [0], [0], [1], [0, 0, 1, 1], [], []>} : vector<8x32xbf16>, vector<32x64xbf16>, vector<8x64xf32> -> vector<8x64xf32>
    %c0_3 = arith.constant 0 : index
    %c0_4 = arith.constant 0 : index
    %4 = vector.load %arg4[%c0_3, %c0_4] : memref<1x64xf32, #tpu.memory_space<vmem>>, vector<1x64xf32>
    %5 = vector.broadcast %4 : vector<1x64xf32> to vector<8x64xf32>
    %6 = arith.addf %3, %5 : vector<8x64xf32>
    %7 = math.sin %6 : vector<8x64xf32>
    %8 = arith.truncf %7 : vector<8x64xf32> to vector<8x64xbf16>
    %c0_5 = arith.constant 0 : index
    %c0_6 = arith.constant 0 : index
    %9 = vector.load %arg5[%c0_5, %c0_6] : memref<8x64xbf16, #tpu.memory_space<vmem>>, vector<8x64xbf16>
    tpu.vector_store %arg5[%c0_5, %c0_6], %8 {strides = array<i32>} : memref<8x64xbf16, #tpu.memory_space<vmem>>, vector<8x64xbf16>,
    return
  }
  func.func @transform_0(%arg0: i32, %arg1: i32) -> (i32, i32) {
    %c0_i32 = arith.constant 0 : i32
    %c0_i32_0 = arith.constant 0 : i32
    return %arg1, %c0_i32 : i32, i32
  }
  func.func @transform_1(%arg0: i32, %arg1: i32) -> (i32, i32) {
    %c0_i32 = arith.constant 0 : i32
    %c0_i32_0 = arith.constant 0 : i32
    return %c0_i32, %arg0 : i32, i32
  }
  func.func @transform_2(%arg0: i32, %arg1: i32) -> (i32, i32) {
    %c0_i32 = arith.constant 0 : i32
    %c0_i32_0 = arith.constant 0 : i32
    return %c0_i32, %arg0 : i32, i32
  }
  func.func @transform_3(%arg0: i32, %arg1: i32) -> (i32, i32) {
    %c0_i32 = arith.constant 0 : i32
    return %arg1, %arg0 : i32, i32
  }
}

</mosaic_0001>

<bundles_post_ra>
// kernel: tpu_custom_call.1
= control target key start
LH: loop header
LB: loop body
LE: loop exit
PB: predicated region body
PF: predicated region fallthrough
CT: control target
= control target key end

     0   :  { %8 = vsyncpa [#allocation3], 0  ;;  %s1052_s0 = inlined_call_operand.hbm [shape: f32[16,32], index: 0, kind: input, shape index: {}]   ;;  %s1053_s1 = inlined_call_operand.hbm [shape: bf16[32,64], index: 1, kind: input, shape index: {}]   ;;  %s1054_s2 = inlined_call_operand.vmem [shape: f32[1,64], index: 2, kind: input, shape index: {}]   ;;  %s1055_s3 = inlined_call_operand.hbm [shape: bf16[16,64], index: 3, kind: output, shape index: {}]  }
   0x1   :  { %10 = vsyncpa [#allocation3 + $0x1], 0 }
   0x2   :  { %11 = vsyncpa [#allocation6], 0 }
   0x3   :  { %12 = vsyncpa [#allocation4], 0 }
   0x4   :  { %14 = vsyncpa [#allocation4 + $0x1], 0  ;;  %s849_s12 = smov 0   ;;  %s851_s13 = smov 0  }
   0x5   :  { %s853_s14 = smov 0   ;;  %s855_s15 = smov 0  }
   0x6   :  { %s857_s16 = smov 0   ;;  %s859_s17 = smov 0  }
   0x7 LB: > { %s558_s18 = sadd.s32 4294967295, %s817_s17   ;;  %p560_p0 = scmp.ge.s32.totalorder %s817_s17, 1  ;;  %s817_s17 = sphi %s859_s17, %s20_s17   ;;  %s813_s16 = sphi %s857_s16, %s1066_s16   ;;  %s809_s15 = sphi %s855_s15, %s1065_s15   ;;  %s805_s14 = sphi %s853_s14, %s1064_s14   ;;  %s801_s13 = sphi %s851_s13, %s1063_s13   ;;  %s797_s12 = sphi %s849_s12, %s1062_s12  }
   0x8   : > { %p881_p1 = scmp.eq.s32.totalorder %s558_s18, 0  ;;  %p143_p2 = scmp.lt.s32.totalorder %s817_s17, 3 }
   0x9   : > { %s156_s22 = sshll.u32 %s1053_s1, 4  ;;  %s819_s24 = smov [#allocation5]   ;;  %s157_s22 = int_to_ptr.hbm [resolvable:$true] %s156_s22 }
   0xa   : > { %p889_p3 = pnand %p560_p0, %p143_p2  ;;  %s158_s25 = sshll.u32 %s819_s24, 4  ;;  %s159_s25 = int_to_ptr.vmem [resolvable:$true] %s158_s25 }
   0xb   : > { %p563_p6 = scmp.ge.s32.totalorder %s817_s17, 2  ;;  %s820_s26 = smov 64  }
   0xc   : > { %p596_p4 = pneg %p889_p3  ;;  %s821_s27 = smov 4  }
   0xd   : > { %s559_s28 = sadd.s32 4294967294, %s817_s17   ;;  %s29_s29 = sadd.s32 1, %s813_s16 }
   0xe   : > { %p597_p5 = pnand %p596_p4, %p881_p1  ;;  %s39_s30 = sadd.s32 1, %s805_s14 }
   0xf   : > { %p30_p7 = scmp.ge.s32.totalorder %s29_s29, 2  ;;  %p46_p8 = scmp.ne.s32.totalorder %s805_s14, %s801_s13 }
  0x10   : > { %599 = dma.hbm_to_vmem [thread:$0]  (!%p597_p5), %s157_s22, 256, %s159_s25, [#allocation6], %s820_s26, %s820_s26, %s821_s27  }
  0x11   : > { %p47_p9 = scmp.eq.s32.totalorder %s817_s17, 0  ;;  %p52_p10 = scmp.ne.s32.totalorder %s801_s13, %s797_s12 }
  0x12   : > { %s1068_s29 = smov (%p30_p7, %s29_s29), 0  ;;  %p130_p13 = scmp.eq.s32.totalorder %s558_s18, 1 }
  0x13   : > { %p908_p11 = por %p47_p9, %p46_p8  ;;  %p914_p12 = por %p881_p1, %p52_p10 }
  0x14   : > { %s36_s6 = ssub.s32 %s813_s16, %s1068_s29  ;;  %p136_p2 = scmp.eq.s32.totalorder %s559_s28, 1 }
  0x15   : > { %p37_p0 = scmp.eq.s32.totalorder %s36_s6, 0  ;;  %p920_p4 = por %p130_p13, %p46_p8 }
  0x16   : > { %p609_p5 = scmp.lt.s32.totalorder %s817_s17, 2  ;;  %p928_p7 = por %p136_p2, %p52_p10 }
  0x17   : > { %s926_s8 = scalar_select %p37_p0, %s805_s14, %s39_s30  }
  0x18   : > { %s178_s10 = sand.u32 1, %s805_s14   ;;  %s565_s20 = sshll.u32 %s813_s16, 3 }
  0x19   : > { %s564_s11 = sshll.u32 %s178_s10, 3  ;;  %s186_s18 = scalar_lea.hbm %s1052_s0, %s565_s20 }
  0x1a   : > { %s182_s24 = scalar_lea.vmem [#allocation2], %s564_s11  ;;  %s188_s26 = sshll.u32 %s186_s18, 4  ;;  %s189_s26 = int_to_ptr.hbm [resolvable:$true] %s188_s26 }
  0x1b   : > { %s190_s25 = sshll.u32 %s182_s24, 4  ;;  %p601_p8 = pnand %p609_p5, %p908_p11  ;;  %s191_s25 = int_to_ptr.vmem [resolvable:$true] %s190_s25 }
  0x1c   : > { %s179_s27 = scalar_lea.sflag [#allocation3], %s178_s10  ;;  %199 = sbr.rel (%p889_p3) target bundleno = 273 (0x111), region = 32 }
  0x1d   : > { %603 = dma.hbm_to_vmem [thread:$0]  (!%p601_p8), %s189_s26, 128, %s191_s25, %s179_s27  }
  0x1e   : > { %s942_s28 = sand.u32 (!%p889_p3), 1, %s801_s13  }
  0x1f   : > { %s567_s30 = sshll.u32 (!%p889_p3), %s942_s28, 3  ;;  %s202_s6 = scalar_lea.sflag (!%p889_p3), [#allocation3], %s942_s28 }
  0x20   : > { %s205_s11 = scalar_lea.vmem (!%p889_p3), [#allocation2], %s567_s30 }
  0x21   : > { %784 = dma.done.wait (%p914_p12), %s202_s6, 128  }
  0x22   : > { %786 = vsyncadd (%p914_p12), %s202_s6, 4294967168 }
  0x23   : > { %788 = dma.done.wait (%p881_p1), [#allocation6], 256  }
  0x24   : > { %790 = vsyncadd (%p881_p1), [#allocation6], 4294967040  ;;  %v587_v0 = vld [vmem:[#allocation5 + $0x8] sm:$0xff]  ;;  %v586_v1 = vld [vmem:[#allocation5] sm:$0xff]  ;;  %vm263_vm0 = vcmask 261120   ;;  %s569_s19 = sshll.u32 %s942_s28, 2 }
  0x25   : > { %273 = vmatpush.bf16.msra.mxu0 %v587_v0  ;;  %v241_v2 = vld [vmem:[%s205_s11] sm:$0xff]  ;;  %v822_v19 = vmov 683565275   ;;  %v823_v21 = vmov 2475754826   ;;  %s583_s5 = sshll.u32 %s809_s15, 2 }
  0x26   : > { %v242_v3 = vpack.c.bf16 %v241_v2, %v241_v2  ;;  %v670_v4 = vld [vmem:[%s1054_s2] ss:$0 sm:$0xff]  ;;  %v824_v24 = vmov 2131351028   ;;  %v825_v27 = vmov 2102212464   ;;  %s450_s21 = scalar_lea.hbm %s1055_s3, %s583_s5 }
  0x27   : > { %v826_v30 = vmov 920167782   ;;  %v827_v33 = vmov 1326507024   ;;  %s236_s22 = scalar_lea.vmem [#allocation7], %s569_s19  ;;  %s454_s24 = sshll.u32 %s450_s21, 4  ;;  %s455_s24 = int_to_ptr.hbm [resolvable:$true] %s454_s24 }
  0x28   : > { %s452_s18 = sshll.u32 %s236_s22, 4  ;;  %s439_s15 = scalar_lea.sflag [#allocation4], %s942_s28  ;;  %s453_s18 = int_to_ptr.vmem [resolvable:$true] %s452_s18 }
  0x29   : > { %274 = vmatpush.bf16.msra.mxu0 %v586_v1  ;;  %s745_s25 = sshra.s32 %s455_s24, 4  ;;  %s751_s6 = scalar_lea.hbm %s1055_s3, 8  ;;  %s746_s25 = int_to_ptr.hbm [resolvable:$true] %s745_s25 }
  0x2a   : > { %s747_s26 = scalar_lea.hbm %s746_s25, 4  ;;  %p752_p10 = scmp.lt.s32.totalorder %s746_s25, %s1055_s3 }
  0x2b   : > { %p748_p1 = scmp.ne.s32.totalorder %s746_s25, %s747_s26  ;;  %p753_p11 = scmp.lt.s32.totalorder %s751_s6, %s747_s26 }
  0x2c   : > { %578 = vmatmul.msk.bf16.vlgmr.msra.gmra.mxu0 %vm263_vm0, %v242_v3  ;;  %v828_v3 = vmov 0  }
  0x2d   : > { %p749_p3 = pnand %p748_p1, %p920_p4  ;;  %p754_p12 = por %p753_p11, %p752_p10 }
  0x2f   : > { %p750_p9 = pneg %p749_p3 }
  0x31   : > { %p755_p13 = pnand %p754_p12, %p750_p9 }
  0xa9   : > { %v276_v5 = vpop.f32.mrf.mxu0 }
  0xaa   : > { %v957_v6 = vadd.f32 %v670_v4, %v276_v5 }
  0xac   : > { %v283_v7 = vand.u32 2139095040, %v957_v6  ;;  %v280_v10 = vand.u32 2147483647, %v957_v6  ;;  %vm282_vm13 = vcmp.lt.s32.totalorder %v957_v6, 0 }
  0xae   : > { %v284_v8 = vshrl.u32 %v283_v7, 23  ;;  %v287_v13 = vand.u32 8388607, %v280_v10  ;;  %vm281_vm14 = vcmp.le.f32.partialorder %v280_v10, 0.7853982 }
  0xb0   : > { %v579_v9 = vadd.s32 4294967169, %v284_v8  ;;  %v288_v17 = vor.u32 8388608, %v287_v13 }
  0xb1   : > { %v278_v11 = vpop.f32.mrf.mxu0 }
  0xb2   : > { %v290_v12 = vadd.s32 1, %v579_v9  ;;  %v974_v40 = vshll.u32 %v288_v17, 8 }
  0xb4   : > { %vm291_vm1 = vcmp.gt.s32.totalorder %v290_v12, 0  ;;  %v329_v49 = vand.u32 65535, %v974_v40  ;;  %v330_v50 = vshrl.u32 %v974_v40, 16 }
  0xb5   : > { %v292_v14 = vsel %vm291_vm1, %v290_v12, 0 }
  0xb6   : > { %v294_v15 = vand.u32 31, %v292_v14  ;;  %v965_v18 = vshrl.u32 %v292_v14, 5 }
  0xb8   : > { %v963_v16 = vsub.s32 32, %v294_v15  ;;  %v297_v20 = vshll.u32 %v822_v19, %v294_v15  ;;  %v300_v22 = vshll.u32 %v823_v21, %v294_v15  ;;  %v303_v26 = vshll.u32 %v824_v24, %v294_v15 }
  0xb9   : > { %v306_v29 = vshll.u32 %v825_v27, %v294_v15  ;;  %v309_v32 = vshll.u32 %v826_v30, %v294_v15  ;;  %vm312_vm2 = vcmp.lt.s32.totalorder %v965_v18, 1  ;;  %vm315_vm3 = vcmp.lt.s32.totalorder %v965_v18, 4 }
  0xba   : > { %v298_v23 = vshrl.u32 %v823_v21, %v963_v16  ;;  %v301_v25 = vshrl.u32 %v824_v24, %v963_v16  ;;  %v304_v28 = vshrl.u32 %v825_v27, %v963_v16  ;;  %v307_v31 = vshrl.u32 %v826_v30, %v963_v16 }
  0xbb   : > { %v310_v34 = vshrl.u32 %v827_v33, %v963_v16  ;;  %vm314_vm4 = vcmp.lt.s32.totalorder %v965_v18, 3  ;;  %vm313_vm5 = vcmp.lt.s32.totalorder %v965_v18, 2  ;;  %v296_v14 = vshrl.u32 %v822_v19, %v963_v16 }
  0xbc   : > { %v299_v35 = vor.u32 %v298_v23, %v297_v20  ;;  %v302_v36 = vor.u32 %v301_v25, %v300_v22  ;;  %v305_v37 = vor.u32 %v304_v28, %v303_v26  ;;  %v308_v38 = vor.u32 %v307_v31, %v306_v29 }
  0xbd   : > { %v311_v39 = vor.u32 %v310_v34, %v309_v32 }
  0xbe   : > { %v320_v41 = vsel %vm312_vm2, %v299_v35, %v302_v36  ;;  %v324_v42 = vsel %vm312_vm2, %v302_v36, %v305_v37  ;;  %v321_v43 = vsel %vm315_vm3, %v308_v38, 920167782  ;;  %v317_v11 = vsel %vm315_vm3, %v305_v37, 2102212464 }
  0xbf   : > { %v325_v44 = vsel %vm315_vm3, %v311_v39, 1326507024  ;;  %v322_v45 = vsel %vm314_vm4, %v305_v37, %v321_v43  ;;  %v316_v23 = vsel %vm312_vm2, %v296_v14, %v299_v35  ;;  %v318_v24 = vsel %vm314_vm4, %v302_v36, %v317_v11 }
  0xc0   : > { %v326_v46 = vsel %vm314_vm4, %v308_v38, %v325_v44  ;;  %v323_v47 = vsel %vm313_vm5, %v320_v41, %v322_v45  ;;  %v319_v16 = vsel %vm313_vm5, %v316_v23, %v318_v24  ;;  %vm423_vm2 = vweird.f32 %v957_v6 }
  0xc1   : > { %v327_v48 = vsel %vm313_vm5, %v324_v42, %v326_v46  ;;  %v353_v53 = vand.u32 65535, %v323_v47  ;;  %v354_v54 = vshrl.u32 %v323_v47, 16  ;;  %v373_v32 = vmul.u32 %v974_v40, %v319_v16 }
  0xc2   : > { %v331_v51 = vand.u32 65535, %v327_v48  ;;  %v332_v52 = vshrl.u32 %v327_v48, 16  ;;  %vm436_vm3 = vcmask 519168  }
  0xc3   : > { %v356_v57 = vmul.u32 %v354_v54, %v329_v49  ;;  %v357_v58 = vmul.u32 %v353_v53, %v330_v50  ;;  %v355_v62 = vmul.u32 %v353_v53, %v329_v49  ;;  %v358_v2 = vmul.u32 %v354_v54, %v330_v50 }
  0xc4   : > { %v334_v55 = vmul.u32 %v332_v52, %v329_v49  ;;  %v335_v56 = vmul.u32 %v331_v51, %v330_v50  ;;  %v333_v59 = vmul.u32 %v331_v51, %v329_v49  ;;  %v336_v61 = vmul.u32 %v332_v52, %v330_v50 }
  0xc5   : > { %v359_v63 = vshll.u32 %v356_v57, 16  ;;  %v361_v5 = vshll.u32 %v357_v58, 16  ;;  %v360_v21 = vshrl.u32 %v356_v57, 16  ;;  %v362_v27 = vshrl.u32 %v357_v58, 16 }
  0xc6   : > { %v337_v60 = vshll.u32 %v334_v55, 16  ;;  %v339_v0 = vshll.u32 %v335_v56, 16  ;;  %v338_v15 = vshrl.u32 %v334_v55, 16  ;;  %v340_v25 = vshrl.u32 %v335_v56, 16 }
  0xc7   : > { %vm363_vm7 = vc.u32 %v355_v62, %v359_v63  ;;  %v365_v7 = vadd.s32 %v359_v63, %v355_v62 }
  0xc8   : > { %vm341_vm6 = vc.u32 %v333_v59, %v337_v60  ;;  %v343_v1 = vadd.s32 %v337_v60, %v333_v59  ;;  %v364_v9 = vsel %vm363_vm7, 1, %v828_v3 }
  0xc9   : > { %v342_v4 = vsel %vm341_vm6, 1, %v828_v3  ;;  %v366_v13 = vadd.s32 %v364_v9, %v358_v2  ;;  %vm367_vm9 = vc.u32 %v365_v7, %v361_v5  ;;  %v369_v30 = vadd.s32 %v365_v7, %v361_v5 }
  0xca   : > { %v344_v8 = vadd.s32 %v342_v4, %v336_v61  ;;  %vm345_vm8 = vc.u32 %v343_v1, %v339_v0  ;;  %v368_v20 = vsel %vm367_vm9, 1, %v828_v3 }
  0xcb   : > { %v346_v12 = vsel %vm345_vm8, 1, %v828_v3  ;;  %v370_v22 = vadd.s32 %v368_v20, %v366_v13 }
  0xcc   : > { %v348_v17 = vadd.s32 %v346_v12, %v344_v8 }
  0xcd   : > { %v371_v28 = vadd.s32 %v370_v22, %v360_v21 }
  0xce   : > { %v349_v26 = vadd.s32 %v348_v17, %v338_v15 }
  0xcf   : > { %v372_v19 = vadd.s32 %v371_v28, %v362_v27 }
  0xd0   : > { %v350_v29 = vadd.s32 %v349_v26, %v340_v25 }
  0xd1   : > { %v376_v31 = vadd.s32 1, %v372_v19 }
  0xd2   : > { %vm375_vm10 = vc.u32 %v350_v29, %v369_v30  ;;  %v374_v18 = vadd.s32 %v369_v30, %v350_v29 }
  0xd3   : > { %v377_v33 = vsel %vm375_vm10, %v376_v31, %v372_v19 }
  0xd4   : > { %v378_v34 = vadd.s32 %v377_v33, %v373_v32 }
  0xd6   : > { %v379_v35 = vadd.s32 536870912, %v378_v34 }
  0xd8   : > { %v380_v37 = vshrl.u32 %v379_v35, 30 }
  0xda   : > { %v381_v38 = vshll.u32 %v380_v37, 30  ;;  %v404_v57 = vsub.s32 4, %v380_v37 }
  0xdc   : > { %v382_v36 = vsub.s32 %v378_v34, %v381_v38  ;;  %v405_v62 = vsel %vm282_vm13, %v404_v57, %v380_v37 }
  0xdd   : > { %v407_v1 = vsel %vm281_vm14, 0, %v405_v62 }
  0xde   : > { %vm383_vm11 = vcmp.lt.s32.totalorder %v382_v36, 0  ;;  %v384_v39 = vsub.s32 0, %v382_v36  ;;  %v424_v7 = vadd.s32 3, %v407_v1 }
  0xe0   : > { %v385_v41 = vsel %vm383_vm11, %v384_v39, %v382_v36  ;;  %v425_v12 = vand.u32 3, %v424_v7 }
  0xe1   : > { %v386_v42 = vclz %v385_v41 }
  0xe2   : > { %vm427_vm15 = vcmp.eq.s32.totalorder %v425_v12, 0  ;;  %vm430_vm0 = vcmp.eq.s32.totalorder %v425_v12, 2  ;;  %vm426_vm1 = vcmp.lt.s32.totalorder %v425_v12, 2 }
  0xe3   : > { %v580_v43 = vadd.s32 4294967294, %v386_v42 }
  0xe5   : > { %vm581_vm12 = vcmp.lt.s32.totalorder %v580_v43, 0 }
  0xe6   : > { %v389_v44 = vsel %vm581_vm12, 0, %v580_v43 }
  0xe7   : > { %v390_v45 = vsub.s32 32, %v389_v44  ;;  %v394_v46 = vsub.s32 4294967266, %v389_v44  ;;  %v391_v47 = vshll.u32 %v382_v36, %v389_v44 }
  0xe9   : > { %v392_v48 = vshrl.u32 %v374_v18, %v390_v45  ;;  %v395_v49 = vadd.s32 127, %v394_v46 }
  0xeb   : > { %v393_v40 = vor.u32 %v392_v48, %v391_v47  ;;  %v396_v50 = vshll.u32 %v395_v49, 23 }
  0xed   : > { %v397_v51 = vor.u32 4788187, %v396_v50  ;;  %v400_v53 = vcvt.s32.f32 %v393_v40 }
  0xef   : > { %v398_v52 = vand.u32 2147483647, %v397_v51 }
  0xf1   : > { %v401_v54 = vmul.f32 %v400_v53, %v398_v52 }
  0xf3   : > { %v402_v55 = vxor.u32 2147483648, %v401_v54 }
  0xf5   : > { %v403_v56 = vsel %vm282_vm13, %v402_v55, %v401_v54 }
  0xf6   : > { %v406_v58 = vsel %vm281_vm14, %v957_v6, %v403_v56 }
  0xf7   : > { %v408_v59 = vmul.f32 %v406_v58, %v406_v58 }
  0xf9   : > { %v416_v60 = vmul.f32 -0.00019511016, %v408_v59  ;;  %v409_v61 = vmul.f32 -0.001358992, %v408_v59 }
  0xfb   : > { %v417_v63 = vadd.f32 0.008332121, %v416_v60  ;;  %v410_v0 = vadd.f32 0.041655596, %v409_v61 }
  0xfd   : > { %v418_v2 = vmul.f32 %v417_v63, %v408_v59  ;;  %v411_v3 = vmul.f32 %v410_v0, %v408_v59 }
  0xff   : > { %v419_v4 = vadd.f32 -0.16666654, %v418_v2  ;;  %v412_v5 = vadd.f32 -0.4999988, %v411_v3 }
 0x101   : > { %v420_v8 = vmul.f32 %v419_v4, %v408_v59  ;;  %v413_v10 = vmul.f32 %v412_v5, %v408_v59 }
 0x103   : > { %v421_v9 = vadd.f32 1.0, %v420_v8  ;;  %v414_v11 = vadd.f32 1.0, %v413_v10 }
 0x105   : > { %v422_v13 = vmul.f32 %v421_v9, %v406_v58  ;;  %v431_v14 = vxor.u32 2147483648, %v414_v11 }
 0x107   : > { %v428_v15 = vxor.u32 2147483648, %v422_v13  ;;  %v432_v20 = vsel %vm430_vm0, %v431_v14, %v422_v13 }
 0x109   : > { %v429_v17 = vsel %vm427_vm15, %v414_v11, %v428_v15 }
 0x10a   : > { %v433_v21 = vsel %vm426_vm1, %v429_v17, %v432_v20 }
 0x10b   : > { %v434_v22 = vsel %vm423_vm2, nan, %v433_v21 }
 0x10c   : > { %v435_v23 = vpack.c.bf16 %v434_v22, %v434_v22 }
 0x10e   : > { %437 = vst.msk [vmem:[%s236_s22] sm:$0xf] %vm436_vm3, %v435_v23 }
 0x10f   : > { %758 = shalt.err (!%p755_p13)
}
 0x110   : > { %594 = dma.vmem_to_hbm [thread:$0]  (%p920_p4), %s453_s18, 64, %s455_s24, %s439_s15  }
 0x111 PF: > { %s466_s28 = sand.u32 1, %s797_s12   ;;  %p605_p0 = pnand %p563_p6, %p928_p7 }
 0x112   : > { %s467_s4 = scalar_lea.sflag [#allocation4], %s466_s28 }
 0x113   : > { %p606_p2 = pneg %p605_p0 }
 0x115   : > { %792 = dma.done.wait (%p606_p2), %s467_s4, 64  }
 0x116   : > { %794 = vsyncadd (%p606_p2), %s467_s4, 4294967232  ;;  %s20_s17 = sadd.s32 1, %s817_s17   ;;  %s1062_s12 = smov %s801_s13 }
 0x117   : > { %p17_p5 = scmp.ge.s32.totalorder %s20_s17, 4   ;;  %s1063_s13 = smov %s805_s14 }
 0x118   : > { %s1064_s14 = smov %s926_s8  ;;  %s1065_s15 = smov %s813_s16 }
 0x119   : > { %s1066_s16 = smov %s1068_s29  ;;  %19 = sbr.rel (!%p17_p5) target bundleno = 7 (0x7), region = 85 }
 0x11e   :  { %473 = vsyncpa [#allocation3], 1 }
 0x11f   :  { %475 = vsyncpa [#allocation3 + $0x1], 1 }
 0x120   :  { %476 = vsyncpa [#allocation6], 1 }
 0x121   :  { %477 = vsyncpa [#allocation4], 1 }
 0x122   :  { %479 = vsyncpa [#allocation4 + $0x1], 1 }

</bundles_post_ra>
